<compile_context>
chip_gen: v7x
topology: tpu7x:2x2x1
jax: 0.10.0
libtpu: 0.0.40
codegen_flags: <defaults>
</compile_context>

<pallas_src>
import jax
import jax.numpy as jnp
from jax.experimental import pallas as pl
from jax.experimental.pallas import tpu as pltpu

_LANE = 128
_DEFAULT_TB_MAX = 256 * 1024            # lane columns per grid step
_VMEM_LIMIT_BYTES = 48 * 1024 * 1024    # > scoped default, < v7x 64 MiB physical
_BYPASS_BATCH = 8192                    # below this, fused XLA GEMV wins


def _round_up(n, m):
    return ((n + m - 1) // m) * m


def _plan_tiles(batch, tb_max):
    """Pad batch to a multiple of 128 and balance it over equal lane tiles."""
    tb_max = max(_LANE, (tb_max // _LANE) * _LANE)
    b128 = _round_up(max(batch, 1), _LANE)
    n_tiles = pl.cdiv(b128, tb_max)
    tb = _round_up(pl.cdiv(b128, n_tiles), _LANE)
    return tb, n_tiles * tb, n_tiles


def linear3_kernel(w_ref, b_ref, x_ref, o_ref):
    # w_ref: (OUT, IN) f32 VMEM    b_ref: (OUT, 1) f32 VMEM
    # x_ref: (IN, TB)  f32 VMEM    o_ref: (OUT, TB) f32 VMEM
    in_features = x_ref.shape[0]
    x = x_ref[...]                               # lane-dense (IN, TB)
    w = w_ref[...]
    acc = x[0:1, :] * w[:, 0:1]                  # (1,TB)*(OUT,1) -> (OUT,TB)
    for i in range(1, in_features):              # fully unrolled VPU FMAs
        acc = acc + x[i:i + 1, :] * w[:, i:i + 1]
    o_ref[...] = (acc + b_ref[...]).astype(o_ref.dtype)   # single lane-dense store


def simple_net_forward_features_first(x_t, W, b, *, tb_max=_DEFAULT_TB_MAX):
    """Compute (x @ W.T + b).T with activations kept feature-major.

    x_t: (IN, B) float32 -- features on sublanes, batch on lanes.  Callers that
    keep this layout end-to-end (and make B a multiple of 128) pay zero
    relayout / padding cost around the kernel.  Returns (OUT, B).
    """
    in_features, batch = x_t.shape
    out_features = W.shape[0]
    tb, b_pad, n_tiles = _plan_tiles(batch, tb_max)

    x_t = x_t.astype(jnp.float32)
    if b_pad != batch:
        x_t = jnp.pad(x_t, ((0, 0), (0, b_pad - batch)))

    y_t = pl.pallas_call(
        linear3_kernel,
        out_shape=jax.ShapeDtypeStruct((out_features, b_pad), jnp.float32),
        grid=(n_tiles,),
        in_specs=[
            # Full-array (3,3) / (3,1) parameter blocks, constant across the grid.
            pl.BlockSpec((out_features, in_features), lambda i: (0, 0)),
            pl.BlockSpec((out_features, 1), lambda i: (0, 0)),
            # Activations tiled along the lane (batch) axis.
            pl.BlockSpec((in_features, tb), lambda i: (0, i)),
        ],
        out_specs=pl.BlockSpec((out_features, tb), lambda i: (0, i)),
        compiler_params=pltpu.CompilerParams(
            dimension_semantics=("arbitrary",),
            vmem_limit_bytes=_VMEM_LIMIT_BYTES,
        ),
    )(W.astype(jnp.float32),
      b.reshape(out_features, 1).astype(jnp.float32),
      x_t)

    return y_t[:, :batch]


def simple_net_forward(x, W, b, *, tb_max=_DEFAULT_TB_MAX,
                       bypass_batch=_BYPASS_BATCH, force_pallas=False):
    """SimpleNet forward in the module's (B, IN) layout: y = x @ W.T + b.

    For small B the pallas path is pure launch/DMA/relayout overhead, so we
    return the fused XLA expression directly.  For large B we relayout once to
    the feature-major kernel layout; callers that can should instead use
    simple_net_forward_features_first and skip the transposes entirely.
    """
    batch = x.shape[0]
    if not force_pallas and batch < bypass_batch:
        return x @ W.T + b
    return simple_net_forward_features_first(x.T, W, b, tb_max=tb_max).T


if __name__ == "__main__":
    key = jax.random.PRNGKey(0)
    k_w, k_b, k_x1, k_x2, k_x3 = jax.random.split(key, 5)

    IN, OUT = 3, 3
    # PyTorch-style init: uniform(-1/sqrt(in), 1/sqrt(in)).
    bound = 1.0 / jnp.sqrt(jnp.float32(IN))
    W = jax.random.uniform(k_w, (OUT, IN), jnp.float32, -bound, bound)   # (out, in)
    b = jax.random.uniform(k_b, (OUT,), jnp.float32, -bound, bound)

    ok = True

    # 1) Preferred feature-major path: no transpose, no padding (B = 256, grid=(1,)).
    x_t = jax.random.normal(k_x1, (IN, 256), jnp.float32)
    y_t = simple_net_forward_features_first(x_t, W, b)
    jax.block_until_ready(y_t)
    ok &= bool(jnp.allclose(y_t, W @ x_t + b[:, None], atol=1e-5, rtol=1e-5))

    # 2) Module-layout (B, 3) path forced through the kernel with a ragged batch
    #    and a multi-tile grid: B=1000 -> pad to 1024, tb=384, grid=(3,).
    x_big = jax.random.normal(k_x2, (1000, IN), jnp.float32)
    y_big = simple_net_forward(x_big, W, b, tb_max=384, force_pallas=True)
    jax.block_until_ready(y_big)
    ok &= bool(jnp.allclose(y_big, x_big @ W.T + b, atol=1e-5, rtol=1e-5))

    # 3) Small-batch bypass (B=8): plain fused XLA op, no pallas launch.
    x_small = jax.random.normal(k_x3, (8, IN), jnp.float32)
    y_small = simple_net_forward(x_small, W, b)
    jax.block_until_ready(y_small)
    ok &= bool(jnp.allclose(y_small, x_small @ W.T + b, atol=1e-5, rtol=1e-5))

    assert ok, "mismatch vs reference"
    print("KERNEL_OK")
</pallas_src>

<mosaic_0001>
module attributes {stable_mosaic.version = 11 : i64} {
  func.func @linear3_kernel(%arg0: i32, %arg1: memref<3x3xf32, #tpu.memory_space<vmem>>, %arg2: memref<3x1xf32, #tpu.memory_space<vmem>>, %arg3: memref<3x256xf32, #tpu.memory_space<vmem>>, %arg4: memref<3x256xf32, #tpu.memory_space<vmem>>) attributes {dimension_semantics = [#tpu.dimension_semantics<arbitrary>], iteration_bounds = array<i64: 1>, scalar_prefetch = 0 : i64, scratch_operands = 0 : i64, tpu.core_type = #tpu.core_type<tc>, window_params = [{pipeline_mode = #tpu.pipeline_mode<synchronous>, transform_indices = @transform_0, window_bounds = array<i64: 3, 3>}, {pipeline_mode = #tpu.pipeline_mode<synchronous>, transform_indices = @transform_1, window_bounds = array<i64: 3, 1>}, {transform_indices = @transform_2, window_bounds = array<i64: 3, 256>}, {transform_indices = @transform_3, window_bounds = array<i64: 3, 256>}]} {
    %c0 = arith.constant 0 : index
    %c0_0 = arith.constant 0 : index
    %0 = vector.load %arg3[%c0, %c0_0] : memref<3x256xf32, #tpu.memory_space<vmem>>, vector<3x256xf32>
    %c0_1 = arith.constant 0 : index
    %c0_2 = arith.constant 0 : index
    %1 = vector.load %arg1[%c0_1, %c0_2] : memref<3x3xf32, #tpu.memory_space<vmem>>, vector<3x3xf32>
    %2 = vector.extract_strided_slice %0 {offsets = [0, 0], sizes = [1, 256], strides = [1, 1]} : vector<3x256xf32> to vector<1x256xf32>
    %3 = vector.extract_strided_slice %1 {offsets = [0, 0], sizes = [3, 1], strides = [1, 1]} : vector<3x3xf32> to vector<3x1xf32>
    %4 = vector.broadcast %2 : vector<1x256xf32> to vector<3x256xf32>
    %5 = vector.broadcast %3 : vector<3x1xf32> to vector<3x256xf32>
    %6 = arith.mulf %4, %5 : vector<3x256xf32>
    %7 = vector.extract_strided_slice %0 {offsets = [1, 0], sizes = [1, 256], strides = [1, 1]} : vector<3x256xf32> to vector<1x256xf32>
    %8 = vector.extract_strided_slice %1 {offsets = [0, 1], sizes = [3, 1], strides = [1, 1]} : vector<3x3xf32> to vector<3x1xf32>
    %9 = vector.broadcast %7 : vector<1x256xf32> to vector<3x256xf32>
    %10 = vector.broadcast %8 : vector<3x1xf32> to vector<3x256xf32>
    %11 = arith.mulf %9, %10 : vector<3x256xf32>
    %12 = arith.addf %6, %11 : vector<3x256xf32>
    %13 = vector.extract_strided_slice %0 {offsets = [2, 0], sizes = [1, 256], strides = [1, 1]} : vector<3x256xf32> to vector<1x256xf32>
    %14 = vector.extract_strided_slice %1 {offsets = [0, 2], sizes = [3, 1], strides = [1, 1]} : vector<3x3xf32> to vector<3x1xf32>
    %15 = vector.broadcast %13 : vector<1x256xf32> to vector<3x256xf32>
    %16 = vector.broadcast %14 : vector<3x1xf32> to vector<3x256xf32>
    %17 = arith.mulf %15, %16 : vector<3x256xf32>
    %18 = arith.addf %12, %17 : vector<3x256xf32>
    %c0_3 = arith.constant 0 : index
    %c0_4 = arith.constant 0 : index
    %19 = vector.load %arg2[%c0_3, %c0_4] : memref<3x1xf32, #tpu.memory_space<vmem>>, vector<3x1xf32>
    %20 = vector.broadcast %19 : vector<3x1xf32> to vector<3x256xf32>
    %21 = arith.addf %18, %20 : vector<3x256xf32>
    %c0_5 = arith.constant 0 : index
    %c0_6 = arith.constant 0 : index
    %22 = vector.load %arg4[%c0_5, %c0_6] : memref<3x256xf32, #tpu.memory_space<vmem>>, vector<3x256xf32>
    tpu.vector_store %arg4[%c0_5, %c0_6], %21 {strides = array<i32>} : memref<3x256xf32, #tpu.memory_space<vmem>>, vector<3x256xf32>,
    return
  }
  func.func @transform_0(%arg0: i32) -> (i32, i32) {
    %c0_i32 = arith.constant 0 : i32
    %c0_i32_0 = arith.constant 0 : i32
    %c0_i32_1 = arith.constant 0 : i32
    return %c0_i32, %c0_i32_0 : i32, i32
  }
  func.func @transform_1(%arg0: i32) -> (i32, i32) {
    %c0_i32 = arith.constant 0 : i32
    %c0_i32_0 = arith.constant 0 : i32
    %c0_i32_1 = arith.constant 0 : i32
    return %c0_i32, %c0_i32_0 : i32, i32
  }
  func.func @transform_2(%arg0: i32) -> (i32, i32) {
    %c0_i32 = arith.constant 0 : i32
    %c0_i32_0 = arith.constant 0 : i32
    return %c0_i32, %arg0 : i32, i32
  }
  func.func @transform_3(%arg0: i32) -> (i32, i32) {
    %c0_i32 = arith.constant 0 : i32
    %c0_i32_0 = arith.constant 0 : i32
    return %c0_i32, %arg0 : i32, i32
  }
}

</mosaic_0001>

<bundles_post_ra>
// kernel: tpu_custom_call.1
= control target key start
LH: loop header
LB: loop body
LE: loop exit
PB: predicated region body
PF: predicated region fallthrough
CT: control target
= control target key end

     0   :  { %v155_v1 = vmov 0   ;;  %v156_v2 = vmov 2   ;;  %s200_s0 = inlined_call_operand.vmem [shape: f32[3,3], index: 0, kind: input, shape index: {}]   ;;  %s201_s1 = inlined_call_operand.vmem [shape: f32[3,1], index: 1, kind: input, shape index: {}]   ;;  %s202_s2 = inlined_call_operand.vmem [shape: f32[3,256], index: 2, kind: input, shape index: {}]   ;;  %s203_s3 = inlined_call_operand.hbm [shape: f32[3,256], index: 3, kind: output, shape index: {}]  }
   0x1   :  { %v16_v0 = vld [vmem:[%s200_s0] sm:$0x7]  ;;  %126 = vset.pattern.permute.xlu0 %v155_v1  ;;  %128 = vset.pattern.permute.xlu1 %v156_v2 }
   0x2   :  { %8 = vsyncpa [#allocation3], 0  ;;  %38 = vperm.xlu0 %126, %v16_v0   ;;  %88 = vperm.xlu1 %128, %v16_v0   ;;  %v95_v3 = vld [vmem:[%s201_s1] sm:$0x7]  ;;  %v157_v4 = vmov 1   ;;  %v18_v5 = vlaneseq  ;;  %s158_s1 = smov [#allocation2]  }
   0x3   :  { %v15_v9 = vld [vmem:[%s202_s2] sm:$0x77]  ;;  %s114_s2 = sshll.u32 %s158_s1, 4  ;;  %s115_s2 = int_to_ptr.vmem [resolvable:$true] %s114_s2 }
   0x4   :  { %v19_v6 = vshrl.u32 %v18_v5, 7  ;;  %s131_s17 = scalar_lea.vmem %s115_s2, 128  ;;  %p136_p1 = scmp.lt.s32.totalorder %s115_s2, %s115_s2 }
   0x5   :  { %p132_p0 = scmp.ne.s32.totalorder %s115_s2, %s131_s17  ;;  %p137_p2 = scmp.lt.s32.totalorder %s131_s17, %s131_s17 }
   0x6   :  { %127 = vset.pattern.permute.xlu0 %v157_v4  ;;  %129 = vset.pattern.permute.xlu1 %v155_v1  ;;  %v20_v7 = vsub.s32 0, %v19_v6  ;;  %v24_v8 = vsub.s32 4, %v19_v6  ;;  %v45_v10 = vsub.s32 1, %v19_v6  ;;  %v49_v11 = vsub.s32 5, %v19_v6 }
   0x7   :  { %62 = vperm.xlu0 %127, %v16_v0   ;;  %98 = vperm.xlu1 %129, %v95_v3   ;;  %v71_v12 = vsub.s32 2, %v19_v6  ;;  %v75_v13 = vsub.s32 6, %v19_v6  ;;  %p138_p3 = por %p137_p2, %p136_p1 }
   0x8   :  { %v21_v14 = vrot.slane %v15_v9, %v20_v7  ;;  %v25_v15 = vrot.slane %v15_v9, %v24_v8  ;;  %v46_v16 = vrot.slane %v15_v9, %v45_v10  ;;  %v50_v17 = vrot.slane %v15_v9, %v49_v11 }
   0x9   :  { %v72_v18 = vrot.slane %v15_v9, %v71_v12  ;;  %v76_v19 = vrot.slane %v15_v9, %v75_v13  ;;  %p139_p4 = pnand %p138_p3, %p132_p0 }
   0xa   :  { %v31_v21 = vrot.slane %v21_v14, %v20_v7  ;;  %v35_v22 = vrot.slane %v25_v15, %v20_v7  ;;  %v56_v23 = vrot.slane %v46_v16, %v45_v10  ;;  %v60_v24 = vrot.slane %v50_v17, %v45_v10 }
   0xb   :  { %130 = vset.pattern.permute.xlu0 %v155_v1  ;;  %v82_v25 = vrot.slane %v72_v18, %v71_v12  ;;  %v86_v26 = vrot.slane %v76_v19, %v71_v12 }
  0x81   :  { %v39_v20 = vpop.permute.xlu0 %38  ;;  %v89_v27 = vpop.permute.xlu1 %88 }
  0x82   :  { %v41_v28 = vmul.f32 %v39_v20, %v31_v21  ;;  %v42_v29 = vmul.f32 %v39_v20, %v35_v22  ;;  %v91_v33 = vmul.f32 %v89_v27, %v82_v25  ;;  %v92_v34 = vmul.f32 %v89_v27, %v86_v26 }
  0x86   :  { %v63_v30 = vpop.permute.xlu0 %62  ;;  %v99_v37 = vpop.permute.xlu1 %98 }
  0x87   :  { %v65_v31 = vmul.f32 %v63_v30, %v56_v23  ;;  %v66_v32 = vmul.f32 %v63_v30, %v60_v24 }
  0x89   :  { %v67_v35 = vadd.f32 %v65_v31, %v41_v28  ;;  %v68_v36 = vadd.f32 %v66_v32, %v42_v29 }
  0x8b   :  { %v93_v38 = vadd.f32 %v91_v33, %v67_v35  ;;  %v94_v39 = vadd.f32 %v92_v34, %v68_v36 }
  0x8d   :  { %v101_v40 = vadd.f32 %v99_v37, %v93_v38  ;;  %v102_v41 = vadd.f32 %v99_v37, %v94_v39 }
  0x8f   :  { %v105_v42 = vcombine.low %v101_v40, %v102_v41 }
  0x91   :  { %107 = vst [vmem:[#allocation2] sm:$0x77] %v105_v42 }
  0x92   :  { %142 = shalt.err (!%p139_p4)
}
  0x93   :  { %s143_s20 = scalar_lea.hbm %s203_s3, 128 }
  0x94   :  { %p144_p5 = scmp.ne.s32.totalorder %s203_s3, %s143_s20  ;;  %p147_p6 = scmp.lt.u32.totalorder %s143_s20, %s203_s3 }
  0x96   :  { %p149_p7 = pnand %p147_p6, %p144_p5 }
  0x98   :  { %152 = shalt.err (!%p149_p7)
}
  0x99   :  { %117 = dma.vmem_to_hbm [thread:$0]  %s115_s2, 128, %s203_s3, [#allocation3]  }
  0x9a   :  { %153 = dma.done.wait [#allocation3], 128  }
  0x9b   :  { %154 = vsyncadd [#allocation3], 4294967168 }
  0x9c   :  { %121 = vsyncpa [#allocation3], 1 }

</bundles_post_ra>
